<compile_context>
chip_gen: v5e
topology: v5e:2x2
jax: 0.10.0
libtpu: 0.0.40
codegen_flags: <defaults>
</compile_context>

<pallas_src>
import functools

import jax
import jax.numpy as jnp
from jax.experimental import pallas as pl
from jax.experimental.pallas import tpu as pltpu


def _pow_static(x, gamma):
    """(x)**gamma with a multiply chain when gamma is a small integer."""
    g = float(gamma)
    if g.is_integer() and 0 <= g <= 16:
        n = int(g)
        if n == 0:
            return jnp.ones_like(x)
        acc = x
        for _ in range(n - 1):
            acc = acc * x
        return acc
    return x ** g  # non-integer gamma: falls back to exp/log on the EUP


def _focal_loss_kernel(pred_ref, target_ref, alpha_ref, out_ref, acc_ref, *,
                       gamma, n_total, tile_n):
    i = pl.program_id(0)

    @pl.when(i == 0)
    def _init():
        acc_ref[...] = jnp.zeros_like(acc_ref)

    pred = pred_ref[...]        # (C, TN) f32  -- samples on the lane axis
    target = target_ref[...]    # (1, TN) i32
    alpha = alpha_ref[...]      # (C, 1)  f32  -- resident across the grid

    C, TN = pred.shape

    # One-hot of the target class along the (small) sublane axis.
    class_ids = jax.lax.broadcasted_iota(jnp.int32, (C, TN), 0)
    onehot = (class_ids == target).astype(jnp.float32)            # (C, TN)

    # Gather: pt[i] = pred[target[i], i],  alpha_t[i] = alpha[target[i]]
    pt = jnp.sum(pred * onehot, axis=0, keepdims=True)            # (1, TN)
    alpha_t = jnp.sum(alpha * onehot, axis=0, keepdims=True)      # (1, TN)

    # Mask the padded tail tile (Pallas pads the last partial block).
    col = jax.lax.broadcasted_iota(jnp.int32, (1, TN), 1)
    valid = (i * tile_n + col) < n_total                          # (1, TN)

    pt_safe = jnp.where(valid, pt, 1.0)       # keeps log() off garbage lanes
    ce_loss = -jnp.log(pt_safe)
    modulator = _pow_static(1.0 - pt_safe, gamma)
    focal = jnp.where(valid, alpha_t * modulator * ce_loss, 0.0)  # (1, TN)

    acc_ref[...] += jnp.sum(focal, axis=1, keepdims=True)         # (1, 1)

    @pl.when(i == pl.num_programs(0) - 1)
    def _finish():
        out_ref[...] = acc_ref[...] * (1.0 / n_total)             # mean


def focal_loss(pred, target, alpha, gamma, *, tile_n=65536):
    """pred: (N, C) f32 probabilities; target: (N,) int; alpha: (C,) f32."""
    N, C = pred.shape

    # Lane-dense presentation: samples on the 128-lane axis.
    pred_t = pred.astype(jnp.float32).T                # (C, N)
    target2d = target.astype(jnp.int32).reshape(1, N)  # (1, N)
    alpha2d = alpha.astype(jnp.float32).reshape(C, 1)  # (C, 1)

    if N <= tile_n:
        tn = N                      # single tile: full-extent block is legal
    else:
        tn = tile_n
        assert tn % 128 == 0, "tile_n must be a multiple of 128"
    num_tiles = pl.cdiv(N, tn)

    kernel = functools.partial(
        _focal_loss_kernel, gamma=float(gamma), n_total=N, tile_n=tn)

    out = pl.pallas_call(
        kernel,
        out_shape=jax.ShapeDtypeStruct((1, 1), jnp.float32),
        grid=(num_tiles,),
        in_specs=[
            pl.BlockSpec((C, tn), lambda i: (0, i)),   # pred tile (streamed)
            pl.BlockSpec((1, tn), lambda i: (0, i)),   # target tile (streamed)
            pl.BlockSpec((C, 1), lambda i: (0, 0)),    # alpha (resident)
        ],
        out_specs=pl.BlockSpec((1, 1), lambda i: (0, 0)),
        scratch_shapes=[pltpu.VMEM((1, 1), jnp.float32)],
        compiler_params=pltpu.CompilerParams(
            dimension_semantics=("arbitrary",)),       # reduction over tiles
    )(pred_t, target2d, alpha2d)
    return out[0, 0]


if __name__ == "__main__":
    key = jax.random.PRNGKey(0)
    gamma = 2.0                                          # args.focal_gamma
    C = 4
    alpha = jnp.array([0.1, 0.2, 0.3, 0.4], dtype=jnp.float32)  # atom_weight

    def reference(pred, target):
        pt = jnp.take_along_axis(pred, target[:, None], axis=1)[:, 0]
        return jnp.mean(alpha[target] * (1.0 - pt) ** gamma * (-jnp.log(pt)))

    # Case 1: small, single tile (matches the module's tiny-batch usage).
    N = 16
    k1, k2 = jax.random.split(key)
    logits = jax.random.normal(k1, (N, C), dtype=jnp.float32)
    pred = jax.nn.softmax(logits, axis=-1)               # module expects probs
    target = jax.random.randint(k2, (N,), 0, C, dtype=jnp.int32)

    loss = focal_loss(pred, target, alpha, gamma)
    jax.block_until_ready(loss)
    ref = reference(pred, target)
    assert jnp.allclose(loss, ref, rtol=1e-5, atol=1e-6), (loss, ref)

    # Case 2: multi-tile with a ragged tail (exercises grid + masking).
    N2 = 1000
    k3, k4 = jax.random.split(k2)
    logits2 = jax.random.normal(k3, (N2, C), dtype=jnp.float32)
    pred2 = jax.nn.softmax(logits2, axis=-1)
    target2 = jax.random.randint(k4, (N2,), 0, C, dtype=jnp.int32)

    loss2 = focal_loss(pred2, target2, alpha, gamma, tile_n=256)
    jax.block_until_ready(loss2)
    ref2 = reference(pred2, target2)
    assert jnp.allclose(loss2, ref2, rtol=1e-5, atol=1e-6), (loss2, ref2)

    print("KERNEL_OK")
</pallas_src>

<mosaic_0001>
module attributes {stable_mosaic.version = 11 : i64} {
  func.func @_focal_loss_kernel(%arg0: i32, %arg1: memref<4x16xf32, #tpu.memory_space<vmem>>, %arg2: memref<1x16xi32, #tpu.memory_space<vmem>>, %arg3: memref<4x1xf32, #tpu.memory_space<vmem>>, %arg4: memref<1x1xf32, #tpu.memory_space<vmem>>, %arg5: memref<1x1xf32, #tpu.memory_space<vmem>>) attributes {dimension_semantics = [#tpu.dimension_semantics<arbitrary>], iteration_bounds = array<i64: 1>, scalar_prefetch = 0 : i64, scratch_operands = 1 : i64, tpu.core_type = #tpu.core_type<tc>, window_params = [{transform_indices = @transform_0, window_bounds = array<i64: 4, 16>}, {transform_indices = @transform_1, window_bounds = array<i64: 1, 16>}, {pipeline_mode = #tpu.pipeline_mode<synchronous>, transform_indices = @transform_2, window_bounds = array<i64: 4, 1>}, {pipeline_mode = #tpu.pipeline_mode<synchronous>, transform_indices = @transform_3, window_bounds = array<i64: 1, 1>}]} {
    %c0_i32 = arith.constant 0 : i32
    %0 = arith.cmpi eq, %arg0, %c0_i32 : i32
    %1 = arith.extui %0 : i1 to i32
    %c0_i32_0 = arith.constant 0 : i32
    %2 = arith.cmpi ne, %1, %c0_i32_0 : i32
    scf.if %2 {
      %cst_19 = arith.constant 0.000000e+00 : f32
      %44 = vector.broadcast %cst_19 : f32 to vector<1x1xf32>
      %c0_20 = arith.constant 0 : index
      %c0_21 = arith.constant 0 : index
      %45 = vector.load %arg5[%c0_20, %c0_21] : memref<1x1xf32, #tpu.memory_space<vmem>>, vector<1x1xf32>
      tpu.vector_store %arg5[%c0_20, %c0_21], %44 {strides = array<i32>} : memref<1x1xf32, #tpu.memory_space<vmem>>, vector<1x1xf32>,
    } else {
    }
    %c0 = arith.constant 0 : index
    %c0_1 = arith.constant 0 : index
    %3 = vector.load %arg1[%c0, %c0_1] : memref<4x16xf32, #tpu.memory_space<vmem>>, vector<4x16xf32>
    %c0_2 = arith.constant 0 : index
    %c0_3 = arith.constant 0 : index
    %4 = vector.load %arg2[%c0_2, %c0_3] : memref<1x16xi32, #tpu.memory_space<vmem>>, vector<1x16xi32>
    %c0_4 = arith.constant 0 : index
    %c0_5 = arith.constant 0 : index
    %5 = vector.load %arg3[%c0_4, %c0_5] : memref<4x1xf32, #tpu.memory_space<vmem>>, vector<4x1xf32>
    %6 = tpu.iota {dimensions = array<i32: 0>} : vector<4x16xi32>
    %7 = vector.broadcast %4 : vector<1x16xi32> to vector<4x16xi32>
    %8 = arith.cmpi eq, %6, %7 : vector<4x16xi32>
    %9 = arith.extui %8 : vector<4x16xi1> to vector<4x16xi32>
    %10 = arith.sitofp %9 : vector<4x16xi32> to vector<4x16xf32>
    %11 = arith.mulf %3, %10 : vector<4x16xf32>
    %cst = arith.constant dense<0.000000e+00> : vector<16xf32>
    %12 = vector.multi_reduction <add>, %11, %cst [0] : vector<4x16xf32> to vector<16xf32>
    %13 = vector.shape_cast %12 : vector<16xf32> to vector<1x16xf32>
    %14 = vector.broadcast %5 : vector<4x1xf32> to vector<4x16xf32>
    %15 = arith.mulf %14, %10 : vector<4x16xf32>
    %cst_6 = arith.constant dense<0.000000e+00> : vector<16xf32>
    %16 = vector.multi_reduction <add>, %15, %cst_6 [0] : vector<4x16xf32> to vector<16xf32>
    %17 = vector.shape_cast %16 : vector<16xf32> to vector<1x16xf32>
    %18 = tpu.iota {dimensions = array<i32: 1>} : vector<1x16xi32>
    %c16_i32 = arith.constant 16 : i32
    %19 = arith.muli %arg0, %c16_i32 : i32
    %20 = vector.broadcast %19 : i32 to vector<1x16xi32>
    %21 = arith.addi %20, %18 : vector<1x16xi32>
    %c16_i32_7 = arith.constant 16 : i32
    %22 = vector.broadcast %c16_i32_7 : i32 to vector<1x16xi32>
    %23 = arith.cmpi slt, %21, %22 : vector<1x16xi32>
    %cst_8 = arith.constant 1.000000e+00 : f32
    %24 = vector.broadcast %cst_8 : f32 to vector<1x16xf32>
    %25 = arith.select %23, %13, %24 : vector<1x16xi1>, vector<1x16xf32>
    %26 = math.log %25 : vector<1x16xf32>
    %cst_9 = arith.constant 0.000000e+00 : f32
    %27 = vector.broadcast %cst_9 : f32 to vector<1x16xf32>
    %28 = arith.subf %27, %26 : vector<1x16xf32>
    %cst_10 = arith.constant 1.000000e+00 : f32
    %29 = vector.broadcast %cst_10 : f32 to vector<1x16xf32>
    %30 = arith.subf %29, %25 : vector<1x16xf32>
    %31 = arith.mulf %30, %30 : vector<1x16xf32>
    %32 = arith.mulf %17, %31 : vector<1x16xf32>
    %33 = arith.mulf %32, %28 : vector<1x16xf32>
    %cst_11 = arith.constant 0.000000e+00 : f32
    %34 = vector.broadcast %cst_11 : f32 to vector<1x16xf32>
    %35 = arith.select %23, %33, %34 : vector<1x16xi1>, vector<1x16xf32>
    %c0_12 = arith.constant 0 : index
    %c0_13 = arith.constant 0 : index
    %36 = vector.load %arg5[%c0_12, %c0_13] : memref<1x1xf32, #tpu.memory_space<vmem>>, vector<1x1xf32>
    %cst_14 = arith.constant dense<0.000000e+00> : vector<1xf32>
    %37 = vector.multi_reduction <add>, %35, %cst_14 [1] : vector<1x16xf32> to vector<1xf32>
    %38 = vector.shape_cast %37 : vector<1xf32> to vector<1x1xf32>
    %39 = arith.addf %36, %38 : vector<1x1xf32>
    %c0_15 = arith.constant 0 : index
    %c0_16 = arith.constant 0 : index
    %40 = vector.load %arg5[%c0_15, %c0_16] : memref<1x1xf32, #tpu.memory_space<vmem>>, vector<1x1xf32>
    tpu.vector_store %arg5[%c0_15, %c0_16], %39 {strides = array<i32>} : memref<1x1xf32, #tpu.memory_space<vmem>>, vector<1x1xf32>,
    %c0_i32_17 = arith.constant 0 : i32
    %41 = arith.cmpi eq, %arg0, %c0_i32_17 : i32
    %42 = arith.extui %41 : i1 to i32
    %c0_i32_18 = arith.constant 0 : i32
    %43 = arith.cmpi ne, %42, %c0_i32_18 : i32
    scf.if %43 {
      %c0_19 = arith.constant 0 : index
      %c0_20 = arith.constant 0 : index
      %44 = vector.load %arg5[%c0_19, %c0_20] : memref<1x1xf32, #tpu.memory_space<vmem>>, vector<1x1xf32>
      %cst_21 = arith.constant 6.250000e-02 : f32
      %45 = vector.broadcast %cst_21 : f32 to vector<1x1xf32>
      %46 = arith.mulf %44, %45 : vector<1x1xf32>
      %c0_22 = arith.constant 0 : index
      %c0_23 = arith.constant 0 : index
      %47 = vector.load %arg4[%c0_22, %c0_23] : memref<1x1xf32, #tpu.memory_space<vmem>>, vector<1x1xf32>
      tpu.vector_store %arg4[%c0_22, %c0_23], %46 {strides = array<i32>} : memref<1x1xf32, #tpu.memory_space<vmem>>, vector<1x1xf32>,
    } else {
    }
    return
  }
  func.func @transform_0(%arg0: i32) -> (i32, i32) {
    %c0_i32 = arith.constant 0 : i32
    %c0_i32_0 = arith.constant 0 : i32
    return %c0_i32, %arg0 : i32, i32
  }
  func.func @transform_1(%arg0: i32) -> (i32, i32) {
    %c0_i32 = arith.constant 0 : i32
    %c0_i32_0 = arith.constant 0 : i32
    return %c0_i32, %arg0 : i32, i32
  }
  func.func @transform_2(%arg0: i32) -> (i32, i32) {
    %c0_i32 = arith.constant 0 : i32
    %c0_i32_0 = arith.constant 0 : i32
    %c0_i32_1 = arith.constant 0 : i32
    return %c0_i32, %c0_i32_0 : i32, i32
  }
  func.func @transform_3(%arg0: i32) -> (i32, i32) {
    %c0_i32 = arith.constant 0 : i32
    %c0_i32_0 = arith.constant 0 : i32
    %c0_i32_1 = arith.constant 0 : i32
    return %c0_i32, %c0_i32_0 : i32, i32
  }
}

</mosaic_0001>

<bundles_post_ra>
// kernel: tpu_custom_call.1
= control target key start
LH: loop header
LB: loop body
LE: loop exit
PB: predicated region body
PF: predicated region fallthrough
CT: control target
= control target key end

     0   :  { %v131_v1 = vmov 0   ;;  %s173_s0 = inlined_call_operand.vmem [shape: f32[4,16], index: 0, kind: input, shape index: {}]   ;;  %s174_s1 = inlined_call_operand.vmem [shape: s32[1,16], index: 1, kind: input, shape index: {}]   ;;  %s175_s2 = inlined_call_operand.vmem [shape: f32[4,1], index: 2, kind: input, shape index: {}]   ;;  %s176_s3 = inlined_call_operand.hbm [shape: f32[1,1], index: 3, kind: output, shape index: {}]  }
   0x1   :  { %v23_v0 = vld [vmem:[%s175_s2] sm:$0xf]  ;;  %101 = vset.pattern.permute.xlu0 %v131_v1 }
   0x2   :  { %8 = vsyncpa [#allocation4], 0  ;;  %41 = vperm.xlu0 %101, %v23_v0   ;;  %v24_v2 = vlaneseq  ;;  %v102_v4 = vld [vmem:[%s174_s1] ss:$0 sm:$0xff]  ;;  %v132_v6 = vmov 0.0   ;;  %vm31_vm1 = vcmask 125952  }
   0x3   :  { %v21_v5 = vld [vmem:[%s173_s0] sm:$0xf]  ;;  %vm19_vm2 = vcmask 0   ;;  %vm68_vm4 = vcmask 130048   ;;  %s133_s0 = smov [#allocation3]   ;;  %s88_s19 = sshll.u32 %s176_s3, 4  ;;  %s89_s19 = int_to_ptr.hbm [resolvable:$true] %s88_s19 }
   0x4   :  { %v25_v3 = vshrl.u32 %v24_v2, 7  ;;  %20 = vst.msk [vmem:[#allocation2] sm:$0x1] %vm19_vm2, %v132_v6  ;;  %v53_v15 = vand.u32 127, %v24_v2  ;;  %s86_s1 = sshll.u32 %s133_s0, 4  ;;  %s87_s1 = int_to_ptr.vmem [resolvable:$true] %s86_s1 }
   0x6   :  { %vm27_vm0 = vcmp.eq.s32.totalorder %v25_v3, %v102_v4  ;;  %vm57_vm3 = vcmp.lt.s32.totalorder %v53_v15, 16 }
   0x7   :  { %v97_v7 = vsel %vm27_vm0, 1.0, %v132_v6 }
   0x8   :  { %v30_v8 = vmul.f32 %v97_v7, %v21_v5 }
   0xa   :  { %v32_v9 = vsel %vm31_vm1, %v30_v8, 0.0 }
   0xb   :  { %v33_v10 = vrot.slane %v32_v9, 4  ;;  %v67_v36 = vld [vmem:[#allocation2] sm:$0x1] }
   0xd   :  { %v34_v11 = vadd.f32 %v33_v10, %v32_v9 }
   0xf   :  { %v35_v12 = vrot.slane %v34_v11, 2 }
  0x11   :  { %v36_v13 = vadd.f32 %v35_v12, %v34_v11 }
  0x13   :  { %v37_v14 = vrot.slane %v36_v13, 1 }
  0x15   :  { %v38_v16 = vadd.f32 %v37_v14, %v36_v13 }
  0x17   :  { %v58_v17 = vsel %vm57_vm3, %v38_v16, 1.0 }
  0x18   :  { %103 = vlog2.f32 %v58_v17  ;;  %v62_v25 = vsub.f32 1.0, %v58_v17 }
  0x1a   :  { %v63_v29 = vmul.f32 %v62_v25, %v62_v25 }
  0x1e   :  { %v104_v23 = vpop.eup %103 }
  0x1f   :  { %v60_v27 = vmul.f32 0.6931472, %v104_v23 }
  0x21   :  { %v61_v31 = vsub.f32 0.0, %v60_v27 }
  0x74   :  { %v42_v18 = vpop.permute.xlu0 %41 }
  0x75   :  { %v44_v19 = vmul.f32 %v97_v7, %v42_v18 }
  0x77   :  { %v45_v20 = vsel %vm31_vm1, %v44_v19, 0.0 }
  0x78   :  { %v46_v21 = vrot.slane %v45_v20, 4 }
  0x7a   :  { %v47_v22 = vadd.f32 %v46_v21, %v45_v20 }
  0x7c   :  { %v48_v24 = vrot.slane %v47_v22, 2 }
  0x7e   :  { %v49_v26 = vadd.f32 %v48_v24, %v47_v22 }
  0x80   :  { %v50_v28 = vrot.slane %v49_v26, 1 }
  0x82   :  { %v51_v30 = vadd.f32 %v50_v28, %v49_v26 }
  0x84   :  { %v64_v32 = vmul.f32 %v63_v29, %v51_v30 }
  0x86   :  { %v65_v33 = vmul.f32 %v64_v32, %v61_v31 }
  0x88   :  { %v66_v34 = vsel %vm57_vm3, %v65_v33, 0.0 }
  0x89   :  { %v69_v35 = vsel %vm68_vm4, %v66_v34, 0.0 }
  0x8a   :  { %70 = vadd.xlane.f32.xlu0 %v69_v35 }
  0xfd   :  { %v71_v37 = vpop.xlane.xlu0 %70 }
  0xfe   :  { %v72_v38 = vadd.f32 %v71_v37, %v67_v36 }
 0x100   :  { %74 = vst.msk [vmem:[#allocation2] sm:$0x1] %vm19_vm2, %v72_v38 }
 0x107   :  { %v78_v39 = vld [vmem:[#allocation2] sm:$0x1] }
 0x108   :  { %v79_v40 = vmul.f32 0.0625, %v78_v39 }
 0x10a   :  { %80 = vst.msk [vmem:[#allocation3] sm:$0x1] %vm19_vm2, %v79_v40 }
 0x10b   :  { %91 = dma.vmem_to_hbm [thread:$0]  %s87_s1, 16, %s89_s19, [#allocation4]  }
 0x10c   :  { %129 = dma.done.wait [#allocation4], 16  }
 0x10d   :  { %130 = vsyncadd [#allocation4], 4294967280 }
 0x10e   :  { %96 = vsyncpa [#allocation4], 1 }

</bundles_post_ra>
